<compile_context>
chip_gen: v6e
topology: v6e:2x2x1
jax: 0.10.0
libtpu: 0.0.40
codegen_flags: <defaults>
</compile_context>

<pallas_src>
import functools

import jax
import jax.numpy as jnp
from jax.experimental import pallas as pl
from jax.experimental.pallas import tpu as pltpu


BN_EPS = 1e-5
LANE = 128           # lane width: pad all feature dims to a multiple of this
SUBLANE = 8
MAX_TILE_N = 512     # batch-tile rows (good spot per tiled-add sweep; fine on v5e/v6e/v7x)
VMEM_LIMIT_BYTES = 48 * 1024 * 1024


def _round_up(x, m):
    return ((x + m - 1) // m) * m


# --------------------------------------------------------------------------- #
# Kernels
# --------------------------------------------------------------------------- #

def _first_layer_kernel(x_ref, w_ref, z_ref, zsum_ref, zsq_ref):
    """z = x @ W0 (hidden bias dropped: BN cancels it); per-tile sum / sumsq."""
    z = jnp.dot(x_ref[...], w_ref[...], preferred_element_type=jnp.float32)
    z_ref[...] = z
    # Padded batch rows of x are zero -> z rows zero -> contribute nothing.
    zsum_ref[0] = jnp.sum(z, axis=0, keepdims=True)
    zsq_ref[0] = jnp.sum(z * z, axis=0, keepdims=True)


def _make_mid_layer_kernel(tile_n, n_valid, mask_rows):
    """relu(z*s + t) of the previous layer fused with the next matmul + stats."""

    def kernel(z_in_ref, s_ref, t_ref, w_ref, z_ref, zsum_ref, zsq_ref):
        # Folded BN + ReLU (f32 elementwise path).
        h = jnp.maximum(z_in_ref[...] * s_ref[...] + t_ref[...], 0.0)
        if mask_rows:
            # Padded z_in rows are zero, but relu(t) can be nonzero: keep padded
            # rows out of the stats / out of the next layer's input.
            row = (pl.program_id(0) * tile_n
                   + jax.lax.broadcasted_iota(jnp.int32, (tile_n, 1), 0))
            h = jnp.where(row < n_valid, h, 0.0)
        z = jnp.dot(h.astype(jnp.bfloat16), w_ref[...],
                    preferred_element_type=jnp.float32)
        z_ref[...] = z
        zsum_ref[0] = jnp.sum(z, axis=0, keepdims=True)
        zsq_ref[0] = jnp.sum(z * z, axis=0, keepdims=True)

    return kernel


def _final_layer_kernel(z_in_ref, s_ref, t_ref, w_ref, b_ref, out_ref):
    """relu(z*s + t) of the last hidden layer fused with the output linear."""
    h = jnp.maximum(z_in_ref[...] * s_ref[...] + t_ref[...], 0.0)
    out_ref[...] = (jnp.dot(h.astype(jnp.bfloat16), w_ref[...],
                            preferred_element_type=jnp.float32) + b_ref[...])


def _linear_kernel(x_ref, w_ref, b_ref, out_ref):
    """num_layers == 1 path: plain linear."""
    out_ref[...] = (jnp.dot(x_ref[...], w_ref[...],
                            preferred_element_type=jnp.float32) + b_ref[...])


# --------------------------------------------------------------------------- #
# Parameter init / glue
# --------------------------------------------------------------------------- #

def init_mlp_params(key, num_layers, input_dim, hidden_dim, output_dim):
    """PyTorch-like defaults: Linear W,b ~ U(-1/sqrt(fan_in), 1/sqrt(fan_in));
    BN gamma=1, beta=0."""
    if num_layers < 1:
        raise ValueError("number of layers should be positive!")
    params = []
    dims = [input_dim] + [hidden_dim] * (num_layers - 1) + [output_dim]
    for i in range(num_layers):
        fan_in, fan_out = dims[i], dims[i + 1]
        key, kw, kb = jax.random.split(key, 3)
        bound = 1.0 / jnp.sqrt(float(fan_in))
        w = jax.random.uniform(kw, (fan_out, fan_in), jnp.float32, -bound, bound)
        b = jax.random.uniform(kb, (fan_out,), jnp.float32, -bound, bound)
        layer = {"w": w, "b": b}
        if i < num_layers - 1:
            layer["gamma"] = jnp.ones((fan_out,), jnp.float32)
            layer["beta"] = jnp.zeros((fan_out,), jnp.float32)
        params.append(layer)
    return params


def prepare_params(params):
    """Glue: transpose W to (in, out), zero-pad all feature dims to multiples of
    128, cast weights to bf16, drop hidden-layer biases (cancelled by BN)."""
    num_layers = len(params)
    flat = []
    for i, layer in enumerate(params):
        w = jnp.transpose(layer["w"])                              # (in, out)
        in_p = _round_up(w.shape[0], LANE)
        out_p = _round_up(w.shape[1], LANE)
        w_p = jnp.pad(w, ((0, in_p - w.shape[0]), (0, out_p - w.shape[1])))
        flat.append(w_p.astype(jnp.bfloat16))
        if i < num_layers - 1:
            g = jnp.pad(layer["gamma"], (0, out_p - layer["gamma"].shape[0]))
            bt = jnp.pad(layer["beta"], (0, out_p - layer["beta"].shape[0]))
            flat.append(g.reshape(1, -1).astype(jnp.float32))
            flat.append(bt.reshape(1, -1).astype(jnp.float32))
        else:
            bias = jnp.pad(layer["b"], (0, out_p - layer["b"].shape[0]))
            flat.append(bias.reshape(1, -1).astype(jnp.float32))
    return tuple(flat)


def _fold_bn(zsum, zsq, gamma, beta, n):
    """Per-tile (n_tiles,1,H) sum/sumsq -> per-feature scale/shift (once per layer)."""
    mean = jnp.sum(zsum, axis=0) / n                     # (1, H)
    ex2 = jnp.sum(zsq, axis=0) / n                       # (1, H)
    var = jnp.maximum(ex2 - mean * mean, 0.0)
    s = gamma * jax.lax.rsqrt(var + BN_EPS)
    t = beta - mean * s
    return s, t


# --------------------------------------------------------------------------- #
# Forward
# --------------------------------------------------------------------------- #

@functools.partial(jax.jit, static_argnames=("num_layers", "output_dim"))
def mlp_forward(x, prep, *, num_layers, output_dim):
    n, in_dim = x.shape

    # Batch (sublane) tiling.
    if n >= MAX_TILE_N:
        tile_n = MAX_TILE_N
    else:
        tile_n = _round_up(n, SUBLANE)
    n_pad = _round_up(n, tile_n)
    n_tiles = n_pad // tile_n
    mask_rows = n_pad > n

    # Every kernel writes only its own output tiles (per-tile partial stats), so
    # the single grid axis is fully parallel -> megacore sharding on v7x.
    cparams = pltpu.CompilerParams(
        dimension_semantics=("parallel",), vmem_limit_bytes=VMEM_LIMIT_BYTES)

    in_pad = prep[0].shape[0]
    x_p = jnp.pad(x, ((0, n_pad - n), (0, in_pad - in_dim))).astype(jnp.bfloat16)

    if num_layers == 1:
        w, b = prep
        o_pad = w.shape[1]
        out_p = pl.pallas_call(
            _linear_kernel,
            grid=(n_tiles,),
            in_specs=[pl.BlockSpec((tile_n, in_pad), lambda i: (i, 0)),
                      pl.BlockSpec((in_pad, o_pad), lambda i: (0, 0)),
                      pl.BlockSpec((1, o_pad), lambda i: (0, 0))],
            out_specs=pl.BlockSpec((tile_n, o_pad), lambda i: (i, 0)),
            out_shape=jax.ShapeDtypeStruct((n_pad, o_pad), jnp.float32),
            compiler_params=cparams,
        )(x_p, w, b)
        return out_p[:n, :output_dim]

    # ---- first hidden layer: z0 = x @ W0 (+ per-tile stats) ----
    w0, gamma0, beta0 = prep[0], prep[1], prep[2]
    idx = 3
    h_pad = w0.shape[1]
    z, zsum, zsq = pl.pallas_call(
        _first_layer_kernel,
        grid=(n_tiles,),
        in_specs=[pl.BlockSpec((tile_n, in_pad), lambda i: (i, 0)),
                  pl.BlockSpec((in_pad, h_pad), lambda i: (0, 0))],
        out_specs=(pl.BlockSpec((tile_n, h_pad), lambda i: (i, 0)),
                   pl.BlockSpec((1, 1, h_pad), lambda i: (i, 0, 0)),
                   pl.BlockSpec((1, 1, h_pad), lambda i: (i, 0, 0))),
        out_shape=(jax.ShapeDtypeStruct((n_pad, h_pad), jnp.float32),
                   jax.ShapeDtypeStruct((n_tiles, 1, h_pad), jnp.float32),
                   jax.ShapeDtypeStruct((n_tiles, 1, h_pad), jnp.float32)),
        compiler_params=cparams,
    )(x_p, w0)
    s, t = _fold_bn(zsum, zsq, gamma0, beta0, n)

    # ---- middle hidden layers: relu(BN(z_prev)) @ W_k (+ per-tile stats) ----
    mid_kernel = _make_mid_layer_kernel(tile_n, n, mask_rows)
    for _ in range(1, num_layers - 1):
        w, gamma, beta = prep[idx], prep[idx + 1], prep[idx + 2]
        idx += 3
        h_out = w.shape[1]
        z, zsum, zsq = pl.pallas_call(
            mid_kernel,
            grid=(n_tiles,),
            in_specs=[pl.BlockSpec((tile_n, h_pad), lambda i: (i, 0)),
                      pl.BlockSpec((1, h_pad), lambda i: (0, 0)),
                      pl.BlockSpec((1, h_pad), lambda i: (0, 0)),
                      pl.BlockSpec((h_pad, h_out), lambda i: (0, 0))],
            out_specs=(pl.BlockSpec((tile_n, h_out), lambda i: (i, 0)),
                       pl.BlockSpec((1, 1, h_out), lambda i: (i, 0, 0)),
                       pl.BlockSpec((1, 1, h_out), lambda i: (i, 0, 0))),
            out_shape=(jax.ShapeDtypeStruct((n_pad, h_out), jnp.float32),
                       jax.ShapeDtypeStruct((n_tiles, 1, h_out), jnp.float32),
                       jax.ShapeDtypeStruct((n_tiles, 1, h_out), jnp.float32)),
            compiler_params=cparams,
        )(z, s, t, w)
        s, t = _fold_bn(zsum, zsq, gamma, beta, n)
        h_pad = h_out

    # ---- final linear: relu(BN(z_last)) @ W_last + b_last ----
    w_last, b_last = prep[idx], prep[idx + 1]
    o_pad = w_last.shape[1]
    out_p = pl.pallas_call(
        _final_layer_kernel,
        grid=(n_tiles,),
        in_specs=[pl.BlockSpec((tile_n, h_pad), lambda i: (i, 0)),
                  pl.BlockSpec((1, h_pad), lambda i: (0, 0)),
                  pl.BlockSpec((1, h_pad), lambda i: (0, 0)),
                  pl.BlockSpec((h_pad, o_pad), lambda i: (0, 0)),
                  pl.BlockSpec((1, o_pad), lambda i: (0, 0))],
        out_specs=pl.BlockSpec((tile_n, o_pad), lambda i: (i, 0)),
        out_shape=jax.ShapeDtypeStruct((n_pad, o_pad), jnp.float32),
        compiler_params=cparams,
    )(z, s, t, w_last, b_last)
    return out_p[:n, :output_dim]


# --------------------------------------------------------------------------- #
# Pure-JAX references
# --------------------------------------------------------------------------- #

def mlp_reference(x, params, matmul_dtype=jnp.float32):
    """PyTorch forward semantics (training-mode BN).  matmul_dtype=bf16 mirrors
    the kernel's MXU precision while keeping BN math in f32."""
    h = x
    num_layers = len(params)
    if num_layers == 1:
        last = params[0]
        return jnp.dot(h.astype(matmul_dtype), last["w"].T.astype(matmul_dtype),
                       preferred_element_type=jnp.float32) + last["b"]
    for i in range(num_layers - 1):
        layer = params[i]
        z = jnp.dot(h.astype(matmul_dtype), layer["w"].T.astype(matmul_dtype),
                    preferred_element_type=jnp.float32) + layer["b"]
        mean = jnp.mean(z, axis=0, keepdims=True)
        var = jnp.mean((z - mean) ** 2, axis=0, keepdims=True)
        zhat = (z - mean) / jnp.sqrt(var + BN_EPS)
        h = jnp.maximum(zhat * layer["gamma"] + layer["beta"], 0.0)
    last = params[-1]
    return jnp.dot(h.astype(matmul_dtype), last["w"].T.astype(matmul_dtype),
                   preferred_element_type=jnp.float32) + last["b"]


# --------------------------------------------------------------------------- #
# Demo
# --------------------------------------------------------------------------- #

if __name__ == "__main__":
    def run_case(num_layers, batch, input_dim, hidden_dim, output_dim):
        key = jax.random.PRNGKey(0)
        key, kx = jax.random.split(key)
        x = jax.random.normal(kx, (batch, input_dim), jnp.float32)
        params = init_mlp_params(key, num_layers, input_dim, hidden_dim, output_dim)
        prep = prepare_params(params)

        out = mlp_forward(x, prep, num_layers=num_layers, output_dim=output_dim)
        out = jax.block_until_ready(out)
        assert out.shape == (batch, output_dim)

        # Tight check vs. a reference with matching (bf16) matmul precision.
        ref_matched = mlp_reference(x, params, matmul_dtype=jnp.bfloat16)
        err_m = float(jnp.max(jnp.abs(out - ref_matched)))
        assert jnp.allclose(out, ref_matched, atol=5e-3, rtol=5e-3), (
            f"matched-precision max abs err = {err_m}")

        # Loose check vs. the pure-f32 PyTorch semantics (bf16 MXU inputs add noise).
        ref_f32 = mlp_reference(x, params, matmul_dtype=jnp.float32)
        err_f = float(jnp.max(jnp.abs(out - ref_f32)))
        assert jnp.allclose(out, ref_f32, atol=1e-1, rtol=1e-1), (
            f"f32 max abs err = {err_f}")

    # Small canonical case: 3 layers, single batch tile, no padding of rows.
    run_case(num_layers=3, batch=8, input_dim=16, hidden_dim=32, output_dim=8)
    # Multi-tile case: exercises batch tiling, row masking and per-tile stats reduce.
    run_case(num_layers=3, batch=600, input_dim=10, hidden_dim=64, output_dim=7)
    # Single-layer (pure linear) path.
    run_case(num_layers=1, batch=8, input_dim=16, hidden_dim=32, output_dim=8)

    print("KERNEL_OK")
</pallas_src>

<mosaic_0001>
module attributes {stable_mosaic.version = 11 : i64} {
  func.func @_first_layer_kernel(%arg0: i32, %arg1: memref<8x128xbf16, #tpu.memory_space<vmem>>, %arg2: memref<128x128xbf16, #tpu.memory_space<vmem>>, %arg3: memref<8x128xf32, #tpu.memory_space<vmem>>, %arg4: memref<1x1x128xf32, #tpu.memory_space<vmem>>, %arg5: memref<1x1x128xf32, #tpu.memory_space<vmem>>) attributes {dimension_semantics = [#tpu.dimension_semantics<parallel>], iteration_bounds = array<i64: 1>, scalar_prefetch = 0 : i64, scratch_operands = 0 : i64, tpu.core_type = #tpu.core_type<tc>, window_params = [{transform_indices = @transform_0, window_bounds = array<i64: 8, 128>}, {pipeline_mode = #tpu.pipeline_mode<synchronous>, transform_indices = @transform_1, window_bounds = array<i64: 128, 128>}, {transform_indices = @transform_2, window_bounds = array<i64: 8, 128>}, {transform_indices = @transform_3, window_bounds = array<i64: 1, 1, 128>}, {transform_indices = @transform_4, window_bounds = array<i64: 1, 1, 128>}]} {
    %c0 = arith.constant 0 : index
    %c0_0 = arith.constant 0 : index
    %0 = vector.load %arg1[%c0, %c0_0] : memref<8x128xbf16, #tpu.memory_space<vmem>>, vector<8x128xbf16>
    %c0_1 = arith.constant 0 : index
    %c0_2 = arith.constant 0 : index
    %1 = vector.load %arg2[%c0_1, %c0_2] : memref<128x128xbf16, #tpu.memory_space<vmem>>, vector<128x128xbf16>
    %cst = arith.constant dense<0.000000e+00> : vector<8x128xf32>
    %2 = tpu.matmul %0, %1, %cst {dimension_numbers = #tpu.dot_dimension_numbers<[1], [0], [0], [1], [0, 0, 1, 1], [], []>} : vector<8x128xbf16>, vector<128x128xbf16>, vector<8x128xf32> -> vector<8x128xf32>
    %c0_3 = arith.constant 0 : index
    %c0_4 = arith.constant 0 : index
    %3 = vector.load %arg3[%c0_3, %c0_4] : memref<8x128xf32, #tpu.memory_space<vmem>>, vector<8x128xf32>
    tpu.vector_store %arg3[%c0_3, %c0_4], %2 {strides = array<i32>} : memref<8x128xf32, #tpu.memory_space<vmem>>, vector<8x128xf32>,
    %cst_5 = arith.constant dense<0.000000e+00> : vector<128xf32>
    %4 = vector.multi_reduction <add>, %2, %cst_5 [0] : vector<8x128xf32> to vector<128xf32>
    %5 = vector.shape_cast %4 : vector<128xf32> to vector<1x128xf32>
    %c0_6 = arith.constant 0 : index
    %c0_7 = arith.constant 0 : index
    %c0_8 = arith.constant 0 : index
    %6 = vector.load %arg4[%c0_6, %c0_7, %c0_8] : memref<1x1x128xf32, #tpu.memory_space<vmem>>, vector<1x1x128xf32>
    %7 = vector.shape_cast %6 : vector<1x1x128xf32> to vector<1x128xf32>
    %8 = vector.shape_cast %5 : vector<1x128xf32> to vector<1x1x128xf32>
    tpu.vector_store %arg4[%c0_6, %c0_7, %c0_8], %8 {strides = array<i32>} : memref<1x1x128xf32, #tpu.memory_space<vmem>>, vector<1x1x128xf32>,
    %9 = arith.mulf %2, %2 : vector<8x128xf32>
    %cst_9 = arith.constant dense<0.000000e+00> : vector<128xf32>
    %10 = vector.multi_reduction <add>, %9, %cst_9 [0] : vector<8x128xf32> to vector<128xf32>
    %11 = vector.shape_cast %10 : vector<128xf32> to vector<1x128xf32>
    %c0_10 = arith.constant 0 : index
    %c0_11 = arith.constant 0 : index
    %c0_12 = arith.constant 0 : index
    %12 = vector.load %arg5[%c0_10, %c0_11, %c0_12] : memref<1x1x128xf32, #tpu.memory_space<vmem>>, vector<1x1x128xf32>
    %13 = vector.shape_cast %12 : vector<1x1x128xf32> to vector<1x128xf32>
    %14 = vector.shape_cast %11 : vector<1x128xf32> to vector<1x1x128xf32>
    tpu.vector_store %arg5[%c0_10, %c0_11, %c0_12], %14 {strides = array<i32>} : memref<1x1x128xf32, #tpu.memory_space<vmem>>, vector<1x1x128xf32>,
    return
  }
  func.func @transform_0(%arg0: i32) -> (i32, i32) {
    %c0_i32 = arith.constant 0 : i32
    %c0_i32_0 = arith.constant 0 : i32
    return %arg0, %c0_i32 : i32, i32
  }
  func.func @transform_1(%arg0: i32) -> (i32, i32) {
    %c0_i32 = arith.constant 0 : i32
    %c0_i32_0 = arith.constant 0 : i32
    %c0_i32_1 = arith.constant 0 : i32
    return %c0_i32, %c0_i32_0 : i32, i32
  }
  func.func @transform_2(%arg0: i32) -> (i32, i32) {
    %c0_i32 = arith.constant 0 : i32
    %c0_i32_0 = arith.constant 0 : i32
    return %arg0, %c0_i32 : i32, i32
  }
  func.func @transform_3(%arg0: i32) -> (i32, i32, i32) {
    %c0_i32 = arith.constant 0 : i32
    %c0_i32_0 = arith.constant 0 : i32
    %c0_i32_1 = arith.constant 0 : i32
    return %arg0, %c0_i32, %c0_i32_0 : i32, i32, i32
  }
  func.func @transform_4(%arg0: i32) -> (i32, i32, i32) {
    %c0_i32 = arith.constant 0 : i32
    %c0_i32_0 = arith.constant 0 : i32
    %c0_i32_1 = arith.constant 0 : i32
    return %arg0, %c0_i32, %c0_i32_0 : i32, i32, i32
  }
}

module attributes {stable_mosaic.version = 11 : i64} {
  func.func @kernel(%arg0: i32, %arg1: memref<8x128xf32, #tpu.memory_space<vmem>>, %arg2: memref<1x128xf32, #tpu.memory_space<vmem>>, %arg3: memref<1x128xf32, #tpu.memory_space<vmem>>, %arg4: memref<128x128xbf16, #tpu.memory_space<vmem>>, %arg5: memref<8x128xf32, #tpu.memory_space<vmem>>, %arg6: memref<1x1x128xf32, #tpu.memory_space<vmem>>, %arg7: memref<1x1x128xf32, #tpu.memory_space<vmem>>) attributes {dimension_semantics = [#tpu.dimension_semantics<parallel>], iteration_bounds = array<i64: 1>, scalar_prefetch = 0 : i64, scratch_operands = 0 : i64, tpu.core_type = #tpu.core_type<tc>, window_params = [{transform_indices = @transform_0, window_bounds = array<i64: 8, 128>}, {pipeline_mode = #tpu.pipeline_mode<synchronous>, transform_indices = @transform_1, window_bounds = array<i64: 1, 128>}, {pipeline_mode = #tpu.pipeline_mode<synchronous>, transform_indices = @transform_2, window_bounds = array<i64: 1, 128>}, {pipeline_mode = #tpu.pipeline_mode<synchronous>, transform_indices = @transform_3, window_bounds = array<i64: 128, 128>}, {transform_indices = @transform_4, window_bounds = array<i64: 8, 128>}, {transform_indices = @transform_5, window_bounds = array<i64: 1, 1, 128>}, {transform_indices = @transform_6, window_bounds = array<i64: 1, 1, 128>}]} {
    %c0 = arith.constant 0 : index
    %c0_0 = arith.constant 0 : index
    %0 = vector.load %arg1[%c0, %c0_0] : memref<8x128xf32, #tpu.memory_space<vmem>>, vector<8x128xf32>
    %c0_1 = arith.constant 0 : index
    %c0_2 = arith.constant 0 : index
    %1 = vector.load %arg2[%c0_1, %c0_2] : memref<1x128xf32, #tpu.memory_space<vmem>>, vector<1x128xf32>
    %2 = vector.broadcast %1 : vector<1x128xf32> to vector<8x128xf32>
    %3 = arith.mulf %0, %2 : vector<8x128xf32>
    %c0_3 = arith.constant 0 : index
    %c0_4 = arith.constant 0 : index
    %4 = vector.load %arg3[%c0_3, %c0_4] : memref<1x128xf32, #tpu.memory_space<vmem>>, vector<1x128xf32>
    %5 = vector.broadcast %4 : vector<1x128xf32> to vector<8x128xf32>
    %6 = arith.addf %3, %5 : vector<8x128xf32>
    %cst = arith.constant 0.000000e+00 : f32
    %7 = vector.broadcast %cst : f32 to vector<8x128xf32>
    %8 = arith.maximumf %6, %7 : vector<8x128xf32>
    %9 = arith.truncf %8 : vector<8x128xf32> to vector<8x128xbf16>
    %c0_5 = arith.constant 0 : index
    %c0_6 = arith.constant 0 : index
    %10 = vector.load %arg4[%c0_5, %c0_6] : memref<128x128xbf16, #tpu.memory_space<vmem>>, vector<128x128xbf16>
    %cst_7 = arith.constant dense<0.000000e+00> : vector<8x128xf32>
    %11 = tpu.matmul %9, %10, %cst_7 {dimension_numbers = #tpu.dot_dimension_numbers<[1], [0], [0], [1], [0, 0, 1, 1], [], []>} : vector<8x128xbf16>, vector<128x128xbf16>, vector<8x128xf32> -> vector<8x128xf32>
    %c0_8 = arith.constant 0 : index
    %c0_9 = arith.constant 0 : index
    %12 = vector.load %arg5[%c0_8, %c0_9] : memref<8x128xf32, #tpu.memory_space<vmem>>, vector<8x128xf32>
    tpu.vector_store %arg5[%c0_8, %c0_9], %11 {strides = array<i32>} : memref<8x128xf32, #tpu.memory_space<vmem>>, vector<8x128xf32>,
    %cst_10 = arith.constant dense<0.000000e+00> : vector<128xf32>
    %13 = vector.multi_reduction <add>, %11, %cst_10 [0] : vector<8x128xf32> to vector<128xf32>
    %14 = vector.shape_cast %13 : vector<128xf32> to vector<1x128xf32>
    %c0_11 = arith.constant 0 : index
    %c0_12 = arith.constant 0 : index
    %c0_13 = arith.constant 0 : index
    %15 = vector.load %arg6[%c0_11, %c0_12, %c0_13] : memref<1x1x128xf32, #tpu.memory_space<vmem>>, vector<1x1x128xf32>
    %16 = vector.shape_cast %15 : vector<1x1x128xf32> to vector<1x128xf32>
    %17 = vector.shape_cast %14 : vector<1x128xf32> to vector<1x1x128xf32>
    tpu.vector_store %arg6[%c0_11, %c0_12, %c0_13], %17 {strides = array<i32>} : memref<1x1x128xf32, #tpu.memory_space<vmem>>, vector<1x1x128xf32>,
    %18 = arith.mulf %11, %11 : vector<8x128xf32>
    %cst_14 = arith.constant dense<0.000000e+00> : vector<128xf32>
    %19 = vector.multi_reduction <add>, %18, %cst_14 [0] : vector<8x128xf32> to vector<128xf32>
    %20 = vector.shape_cast %19 : vector<128xf32> to vector<1x128xf32>
    %c0_15 = arith.constant 0 : index
    %c0_16 = arith.constant 0 : index
    %c0_17 = arith.constant 0 : index
    %21 = vector.load %arg7[%c0_15, %c0_16, %c0_17] : memref<1x1x128xf32, #tpu.memory_space<vmem>>, vector<1x1x128xf32>
    %22 = vector.shape_cast %21 : vector<1x1x128xf32> to vector<1x128xf32>
    %23 = vector.shape_cast %20 : vector<1x128xf32> to vector<1x1x128xf32>
    tpu.vector_store %arg7[%c0_15, %c0_16, %c0_17], %23 {strides = array<i32>} : memref<1x1x128xf32, #tpu.memory_space<vmem>>, vector<1x1x128xf32>,
    return
  }
  func.func @transform_0(%arg0: i32) -> (i32, i32) {
    %c0_i32 = arith.constant 0 : i32
    %c0_i32_0 = arith.constant 0 : i32
    return %arg0, %c0_i32 : i32, i32
  }
  func.func @transform_1(%arg0: i32) -> (i32, i32) {
    %c0_i32 = arith.constant 0 : i32
    %c0_i32_0 = arith.constant 0 : i32
    %c0_i32_1 = arith.constant 0 : i32
    return %c0_i32, %c0_i32_0 : i32, i32
  }
  func.func @transform_2(%arg0: i32) -> (i32, i32) {
    %c0_i32 = arith.constant 0 : i32
    %c0_i32_0 = arith.constant 0 : i32
    %c0_i32_1 = arith.constant 0 : i32
    return %c0_i32, %c0_i32_0 : i32, i32
  }
  func.func @transform_3(%arg0: i32) -> (i32, i32) {
    %c0_i32 = arith.constant 0 : i32
    %c0_i32_0 = arith.constant 0 : i32
    %c0_i32_1 = arith.constant 0 : i32
    return %c0_i32, %c0_i32_0 : i32, i32
  }
  func.func @transform_4(%arg0: i32) -> (i32, i32) {
    %c0_i32 = arith.constant 0 : i32
    %c0_i32_0 = arith.constant 0 : i32
    return %arg0, %c0_i32 : i32, i32
  }
  func.func @transform_5(%arg0: i32) -> (i32, i32, i32) {
    %c0_i32 = arith.constant 0 : i32
    %c0_i32_0 = arith.constant 0 : i32
    %c0_i32_1 = arith.constant 0 : i32
    return %arg0, %c0_i32, %c0_i32_0 : i32, i32, i32
  }
  func.func @transform_6(%arg0: i32) -> (i32, i32, i32) {
    %c0_i32 = arith.constant 0 : i32
    %c0_i32_0 = arith.constant 0 : i32
    %c0_i32_1 = arith.constant 0 : i32
    return %arg0, %c0_i32, %c0_i32_0 : i32, i32, i32
  }
}

module attributes {stable_mosaic.version = 11 : i64} {
  func.func @_final_layer_kernel(%arg0: i32, %arg1: memref<8x128xf32, #tpu.memory_space<vmem>>, %arg2: memref<1x128xf32, #tpu.memory_space<vmem>>, %arg3: memref<1x128xf32, #tpu.memory_space<vmem>>, %arg4: memref<128x128xbf16, #tpu.memory_space<vmem>>, %arg5: memref<1x128xf32, #tpu.memory_space<vmem>>, %arg6: memref<8x128xf32, #tpu.memory_space<vmem>>) attributes {dimension_semantics = [#tpu.dimension_semantics<parallel>], iteration_bounds = array<i64: 1>, scalar_prefetch = 0 : i64, scratch_operands = 0 : i64, tpu.core_type = #tpu.core_type<tc>, window_params = [{transform_indices = @transform_0, window_bounds = array<i64: 8, 128>}, {pipeline_mode = #tpu.pipeline_mode<synchronous>, transform_indices = @transform_1, window_bounds = array<i64: 1, 128>}, {pipeline_mode = #tpu.pipeline_mode<synchronous>, transform_indices = @transform_2, window_bounds = array<i64: 1, 128>}, {pipeline_mode = #tpu.pipeline_mode<synchronous>, transform_indices = @transform_3, window_bounds = array<i64: 128, 128>}, {pipeline_mode = #tpu.pipeline_mode<synchronous>, transform_indices = @transform_4, window_bounds = array<i64: 1, 128>}, {transform_indices = @transform_5, window_bounds = array<i64: 8, 128>}]} {
    %c0 = arith.constant 0 : index
    %c0_0 = arith.constant 0 : index
    %0 = vector.load %arg1[%c0, %c0_0] : memref<8x128xf32, #tpu.memory_space<vmem>>, vector<8x128xf32>
    %c0_1 = arith.constant 0 : index
    %c0_2 = arith.constant 0 : index
    %1 = vector.load %arg2[%c0_1, %c0_2] : memref<1x128xf32, #tpu.memory_space<vmem>>, vector<1x128xf32>
    %2 = vector.broadcast %1 : vector<1x128xf32> to vector<8x128xf32>
    %3 = arith.mulf %0, %2 : vector<8x128xf32>
    %c0_3 = arith.constant 0 : index
    %c0_4 = arith.constant 0 : index
    %4 = vector.load %arg3[%c0_3, %c0_4] : memref<1x128xf32, #tpu.memory_space<vmem>>, vector<1x128xf32>
    %5 = vector.broadcast %4 : vector<1x128xf32> to vector<8x128xf32>
    %6 = arith.addf %3, %5 : vector<8x128xf32>
    %cst = arith.constant 0.000000e+00 : f32
    %7 = vector.broadcast %cst : f32 to vector<8x128xf32>
    %8 = arith.maximumf %6, %7 : vector<8x128xf32>
    %9 = arith.truncf %8 : vector<8x128xf32> to vector<8x128xbf16>
    %c0_5 = arith.constant 0 : index
    %c0_6 = arith.constant 0 : index
    %10 = vector.load %arg4[%c0_5, %c0_6] : memref<128x128xbf16, #tpu.memory_space<vmem>>, vector<128x128xbf16>
    %cst_7 = arith.constant dense<0.000000e+00> : vector<8x128xf32>
    %11 = tpu.matmul %9, %10, %cst_7 {dimension_numbers = #tpu.dot_dimension_numbers<[1], [0], [0], [1], [0, 0, 1, 1], [], []>} : vector<8x128xbf16>, vector<128x128xbf16>, vector<8x128xf32> -> vector<8x128xf32>
    %c0_8 = arith.constant 0 : index
    %c0_9 = arith.constant 0 : index
    %12 = vector.load %arg5[%c0_8, %c0_9] : memref<1x128xf32, #tpu.memory_space<vmem>>, vector<1x128xf32>
    %13 = vector.broadcast %12 : vector<1x128xf32> to vector<8x128xf32>
    %14 = arith.addf %11, %13 : vector<8x128xf32>
    %c0_10 = arith.constant 0 : index
    %c0_11 = arith.constant 0 : index
    %15 = vector.load %arg6[%c0_10, %c0_11] : memref<8x128xf32, #tpu.memory_space<vmem>>, vector<8x128xf32>
    tpu.vector_store %arg6[%c0_10, %c0_11], %14 {strides = array<i32>} : memref<8x128xf32, #tpu.memory_space<vmem>>, vector<8x128xf32>,
    return
  }
  func.func @transform_0(%arg0: i32) -> (i32, i32) {
    %c0_i32 = arith.constant 0 : i32
    %c0_i32_0 = arith.constant 0 : i32
    return %arg0, %c0_i32 : i32, i32
  }
  func.func @transform_1(%arg0: i32) -> (i32, i32) {
    %c0_i32 = arith.constant 0 : i32
    %c0_i32_0 = arith.constant 0 : i32
    %c0_i32_1 = arith.constant 0 : i32
    return %c0_i32, %c0_i32_0 : i32, i32
  }
  func.func @transform_2(%arg0: i32) -> (i32, i32) {
    %c0_i32 = arith.constant 0 : i32
    %c0_i32_0 = arith.constant 0 : i32
    %c0_i32_1 = arith.constant 0 : i32
    return %c0_i32, %c0_i32_0 : i32, i32
  }
  func.func @transform_3(%arg0: i32) -> (i32, i32) {
    %c0_i32 = arith.constant 0 : i32
    %c0_i32_0 = arith.constant 0 : i32
    %c0_i32_1 = arith.constant 0 : i32
    return %c0_i32, %c0_i32_0 : i32, i32
  }
  func.func @transform_4(%arg0: i32) -> (i32, i32) {
    %c0_i32 = arith.constant 0 : i32
    %c0_i32_0 = arith.constant 0 : i32
    %c0_i32_1 = arith.constant 0 : i32
    return %c0_i32, %c0_i32_0 : i32, i32
  }
  func.func @transform_5(%arg0: i32) -> (i32, i32) {
    %c0_i32 = arith.constant 0 : i32
    %c0_i32_0 = arith.constant 0 : i32
    return %arg0, %c0_i32 : i32, i32
  }
}

</mosaic_0001>

<bundles_post_ra>
// kernel: mlp_forward.3
= control target key start
LH: loop header
LB: loop body
LE: loop exit
PB: predicated region body
PF: predicated region fallthrough
CT: control target
= control target key end

     0   :  { %10 = vsyncpa [#allocation3], 0  ;;  %s235_s15 = smov [#allocation2]   ;;  %s280_s0 = inlined_call_operand.vmem [shape: bf16[8,128], index: 0, kind: input, shape index: {}]   ;;  %s281_s1 = inlined_call_operand.hbm [shape: bf16[128,128], index: 1, kind: input, shape index: {}]   ;;  %s282_s2 = inlined_call_operand.vmem [shape: f32[8,128], index: 2, kind: output, shape index: {0}]   ;;  %s283_s3 = inlined_call_operand.vmem [shape: f32[1,1,128], index: 3, kind: output, shape index: {1}]   ;;  %s284_s4 = inlined_call_operand.vmem [shape: f32[1,1,128], index: 4, kind: output, shape index: {2}]  }
   0x1   :  { %s18_s16 = sshll.u32 %s235_s15, 4  ;;  %s19_s16 = int_to_ptr.vmem [resolvable:$true] %s18_s16 }
   0x2   :  { %s221_s17 = scalar_lea.vmem %s19_s16, 1024  ;;  %p226_p1 = scmp.lt.s32.totalorder %s19_s16, %s19_s16 }
   0x3   :  { %p222_p0 = scmp.ne.s32.totalorder %s19_s16, %s221_s17  ;;  %p227_p2 = scmp.lt.s32.totalorder %s221_s17, %s221_s17 }
   0x5   :  { %p228_p3 = por %p227_p2, %p226_p1 }
   0x7   :  { %p229_p4 = pnand %p228_p3, %p222_p0 }
   0x9   :  { %232 = shalt.err (!%p229_p4)
}
   0xa   :  { %s236_s18 = smov 64   ;;  %s237_s19 = smov 4  }
   0xb   :  { %24 = dma.hbm_to_vmem [thread:$0]  %s281_s1, 1024, %s19_s16, [#allocation3], %s236_s18, %s236_s18, %s237_s19  }
   0xc   :  { %233 = dma.done.wait [#allocation3], 1024  }
   0xd   :  { %234 = vsyncadd [#allocation3], 4294966272  ;;  %v238_v0 = vmov 0.0   ;;  %vm239_vm0 = vmmov 0   ;;  %v205_v1 = vld [vmem:[#allocation2 + $0x38] sm:$0xff]   ;;  %v206_v2 = vld [vmem:[#allocation2 + $0x30] sm:$0xff]  }
   0xe   :  { %180 = vmatprep.subr.bf16.mxu0 %v238_v0  ;;  %196 = vmatprep.mubr.msk.bf16.mxu0 %vm239_vm0, %v238_v0  ;;  %v207_v3 = vld [vmem:[#allocation2 + $0x28] sm:$0xff]   ;;  %v208_v4 = vld [vmem:[#allocation2 + $0x20] sm:$0xff]   ;;  %v209_v5 = vld [vmem:[#allocation2 + $0x18] sm:$0xff]  }
   0xf   :  { %181 = vmatpush3.bf16.msra.mxu0 %v205_v1  ;;  %v210_v6 = vld [vmem:[#allocation2 + $0x10] sm:$0xff]   ;;  %v211_v7 = vld [vmem:[#allocation2 + $0x8] sm:$0xff]   ;;  %v212_v8 = vld [vmem:[#allocation2] sm:$0xff]  }
  0x10   :  { %182 = vmatprep.subr.bf16.mxu0 %v238_v0  ;;  %v29_v9 = vld [vmem:[%s280_s0] sm:$0xf] }
  0x13   :  { %183 = vmatpush3.bf16.msra.mxu0 %v206_v2 }
  0x14   :  { %184 = vmatprep.subr.bf16.mxu0 %v238_v0 }
  0x17   :  { %185 = vmatpush3.bf16.msra.mxu0 %v207_v3 }
  0x18   :  { %186 = vmatprep.subr.bf16.mxu0 %v238_v0 }
  0x1b   :  { %187 = vmatpush3.bf16.msra.mxu0 %v208_v4 }
  0x1c   :  { %188 = vmatprep.subr.bf16.mxu0 %v238_v0 }
  0x1f   :  { %189 = vmatpush3.bf16.msra.mxu0 %v209_v5 }
  0x20   :  { %190 = vmatprep.subr.bf16.mxu0 %v238_v0 }
  0x23   :  { %191 = vmatpush3.bf16.msra.mxu0 %v210_v6 }
  0x24   :  { %192 = vmatprep.subr.bf16.mxu0 %v238_v0 }
  0x27   :  { %193 = vmatpush3.bf16.msra.mxu0 %v211_v7 }
  0x28   :  { %194 = vmatprep.subr.bf16.mxu0 %v238_v0 }
  0x2b   :  { %195 = vmatpush3.bf16.msra.mxu0 %v212_v8 }
  0x2e   :  { %197 = vmatmul.mubr.bf16.vlgmr.msra.gmra.mxu0 %v29_v9 }
  0xee   :  { %v128_v10 = vpop.f32.mrf.mxu0 }
  0xef   :  { %134 = vst [vmem:[%s282_s2] sm:$0xff] %v128_v10  ;;  %v135_v11 = vrot.slane %v128_v10, 4  ;;  %v142_v12 = vmul.f32 %v128_v10, %v128_v10 }
  0xf0   :  { %v198_v13 = vpop.f32.mrf.mxu0 }
  0xf1   :  { %v136_v14 = vadd.f32 %v135_v11, %v128_v10  ;;  %v143_v15 = vrot.slane %v142_v12, 4 }
  0xf2   :  { %v131_v16 = vpop.f32.mrf.mxu0 }
  0xf3   :  { %v137_v17 = vrot.slane %v136_v14, 2  ;;  %v144_v18 = vadd.f32 %v143_v15, %v142_v12 }
  0xf4   :  { %v199_v19 = vpop.f32.mrf.mxu0 }
  0xf5   :  { %v138_v20 = vadd.f32 %v137_v17, %v136_v14  ;;  %v145_v21 = vrot.slane %v144_v18, 2 }
  0xf7   :  { %v139_v22 = vrot.slane %v138_v20, 1  ;;  %v146_v23 = vadd.f32 %v145_v21, %v144_v18 }
  0xf9   :  { %v140_v24 = vadd.f32 %v139_v22, %v138_v20  ;;  %v147_v25 = vrot.slane %v146_v23, 1 }
  0xfb   :  { %141 = vst [vmem:[%s283_s3] sm:$0x1] %v140_v24  ;;  %v148_v26 = vadd.f32 %v147_v25, %v146_v23 }
  0xfd   :  { %149 = vst [vmem:[%s284_s4] sm:$0x1] %v148_v26 }
  0xfe   :  { %162 = vsyncpa [#allocation3], 1 }

// kernel: mlp_forward.4
= control target key start
LH: loop header
LB: loop body
LE: loop exit
PB: predicated region body
PF: predicated region fallthrough
CT: control target
= control target key end

     0   :  { %v221_v0 = vmov 0.0   ;;  %vm222_vm0 = vmmov 0   ;;  %s300_s3 = inlined_call_operand.vmem [shape: bf16[128,128], index: 3, kind: input, shape index: {}]   ;;  %s301_s0 = inlined_call_operand.vmem [shape: f32[8,128], index: 0, kind: input, shape index: {}]   ;;  %s302_s1 = inlined_call_operand.vmem [shape: f32[1,128], index: 1, kind: input, shape index: {}]   ;;  %s303_s2 = inlined_call_operand.vmem [shape: f32[1,128], index: 2, kind: input, shape index: {}]   ;;  %s304_s4 = inlined_call_operand.vmem [shape: f32[8,128], index: 4, kind: output, shape index: {0}]   ;;  %s305_s5 = inlined_call_operand.vmem [shape: f32[1,1,128], index: 5, kind: output, shape index: {1}]   ;;  %s306_s6 = inlined_call_operand.vmem [shape: f32[1,1,128], index: 6, kind: output, shape index: {2}]  }
   0x1   :  { %191 = vmatprep.subr.bf16.mxu0 %v221_v0  ;;  %v213_v1 = vld [vmem:[%s300_s3 + $0x38] sm:$0xff]   ;;  %207 = vmatprep.mubr.msk.bf16.mxu0 %vm222_vm0, %v221_v0  ;;  %v214_v2 = vld [vmem:[%s300_s3 + $0x30] sm:$0xff]   ;;  %v215_v3 = vld [vmem:[%s300_s3 + $0x28] sm:$0xff]  }
   0x2   :  { %192 = vmatpush3.bf16.msra.mxu0 %v213_v1  ;;  %v216_v4 = vld [vmem:[%s300_s3 + $0x20] sm:$0xff]   ;;  %v217_v5 = vld [vmem:[%s300_s3 + $0x18] sm:$0xff]   ;;  %v218_v9 = vld [vmem:[%s300_s3 + $0x10] sm:$0xff]  }
   0x3   :  { %193 = vmatprep.subr.bf16.mxu0 %v221_v0  ;;  %v21_v6 = vld [vmem:[%s301_s0] sm:$0xff]  ;;  %v219_v12 = vld [vmem:[%s300_s3 + $0x8] sm:$0xff]  }
   0x4   :  { %v172_v7 = vld [vmem:[%s302_s1] ss:$0 sm:$0xff] }
   0x5   :  { %v29_v8 = vmul.f32 %v172_v7, %v21_v6  ;;  %v173_v10 = vld [vmem:[%s303_s2] ss:$0 sm:$0xff] }
   0x6   :  { %194 = vmatpush3.bf16.msra.mxu0 %v214_v2  ;;  %v220_v14 = vld [vmem:[%s300_s3] sm:$0xff]  }
   0x7   :  { %195 = vmatprep.subr.bf16.mxu0 %v221_v0  ;;  %v37_v11 = vadd.f32 %v173_v10, %v29_v8 }
   0x9   :  { %v38_v13 = vmax.f32 %v37_v11, 0.0 }
   0xa   :  { %196 = vmatpush3.bf16.msra.mxu0 %v215_v3 }
   0xb   :  { %197 = vmatprep.subr.bf16.mxu0 %v221_v0  ;;  %v39_v15 = vpack.c.bf16 %v38_v13, %v38_v13 }
   0xe   :  { %198 = vmatpush3.bf16.msra.mxu0 %v216_v4 }
   0xf   :  { %199 = vmatprep.subr.bf16.mxu0 %v221_v0 }
  0x12   :  { %200 = vmatpush3.bf16.msra.mxu0 %v217_v5 }
  0x13   :  { %201 = vmatprep.subr.bf16.mxu0 %v221_v0 }
  0x16   :  { %202 = vmatpush3.bf16.msra.mxu0 %v218_v9 }
  0x17   :  { %203 = vmatprep.subr.bf16.mxu0 %v221_v0 }
  0x1a   :  { %204 = vmatpush3.bf16.msra.mxu0 %v219_v12 }
  0x1b   :  { %205 = vmatprep.subr.bf16.mxu0 %v221_v0 }
  0x1e   :  { %206 = vmatpush3.bf16.msra.mxu0 %v220_v14 }
  0x21   :  { %208 = vmatmul.mubr.bf16.vlgmr.msra.gmra.mxu0 %v39_v15 }
  0xe1   :  { %v138_v16 = vpop.f32.mrf.mxu0 }
  0xe2   :  { %144 = vst [vmem:[%s304_s4] sm:$0xff] %v138_v16  ;;  %v145_v17 = vrot.slane %v138_v16, 4  ;;  %v152_v18 = vmul.f32 %v138_v16, %v138_v16 }
  0xe3   :  { %v209_v19 = vpop.f32.mrf.mxu0 }
  0xe4   :  { %v146_v20 = vadd.f32 %v145_v17, %v138_v16  ;;  %v153_v21 = vrot.slane %v152_v18, 4 }
  0xe5   :  { %v141_v22 = vpop.f32.mrf.mxu0 }
  0xe6   :  { %v147_v23 = vrot.slane %v146_v20, 2  ;;  %v154_v24 = vadd.f32 %v153_v21, %v152_v18 }
  0xe7   :  { %v210_v25 = vpop.f32.mrf.mxu0 }
  0xe8   :  { %v148_v26 = vadd.f32 %v147_v23, %v146_v20  ;;  %v155_v27 = vrot.slane %v154_v24, 2 }
  0xea   :  { %v149_v28 = vrot.slane %v148_v26, 1  ;;  %v156_v29 = vadd.f32 %v155_v27, %v154_v24 }
  0xec   :  { %v150_v30 = vadd.f32 %v149_v28, %v148_v26  ;;  %v157_v31 = vrot.slane %v156_v29, 1 }
  0xee   :  { %151 = vst [vmem:[%s305_s5] sm:$0x1] %v150_v30  ;;  %v158_v32 = vadd.f32 %v157_v31, %v156_v29 }
  0xf0   :  { %159 = vst [vmem:[%s306_s6] sm:$0x1] %v158_v32 }

// kernel: mlp_forward.5
= control target key start
LH: loop header
LB: loop body
LE: loop exit
PB: predicated region body
PF: predicated region fallthrough
CT: control target
= control target key end

     0   :  { %v240_v1 = vmov 0.0   ;;  %vm241_vm0 = vmmov 0   ;;  %s312_s0 = inlined_call_operand.vmem [shape: f32[8,128], index: 0, kind: input, shape index: {}]   ;;  %s313_s1 = inlined_call_operand.vmem [shape: f32[1,128], index: 1, kind: input, shape index: {}]   ;;  %s314_s2 = inlined_call_operand.vmem [shape: f32[1,128], index: 2, kind: input, shape index: {}]   ;;  %s315_s3 = inlined_call_operand.vmem [shape: bf16[128,128], index: 3, kind: input, shape index: {}]   ;;  %s316_s4 = inlined_call_operand.vmem [shape: f32[1,128], index: 4, kind: input, shape index: {}]   ;;  %s317_s5 = inlined_call_operand.hbm [shape: f32[8,128], index: 5, kind: output, shape index: {}]  }
   0x1   :  { %v210_v0 = vld [vmem:[%s315_s3 + $0x38] sm:$0xff]   ;;  %187 = vmatprep.subr.bf16.mxu0 %v240_v1  ;;  %v211_v2 = vld [vmem:[%s315_s3 + $0x30] sm:$0xff]   ;;  %203 = vmatprep.mubr.msk.bf16.mxu0 %vm241_vm0, %v240_v1  ;;  %v212_v3 = vld [vmem:[%s315_s3 + $0x28] sm:$0xff]  }
   0x2   :  { %188 = vmatpush3.bf16.msra.mxu0 %v210_v0 }
   0x3   :  { %189 = vmatprep.subr.bf16.mxu0 %v240_v1 }
   0x6   :  { %190 = vmatpush3.bf16.msra.mxu0 %v211_v2 }
   0x7   :  { %191 = vmatprep.subr.bf16.mxu0 %v240_v1 }
   0x8   :  { %10 = vsyncpa [#allocation3], 0  ;;  %v213_v4 = vld [vmem:[%s315_s3 + $0x20] sm:$0xff]   ;;  %v214_v5 = vld [vmem:[%s315_s3 + $0x18] sm:$0xff]   ;;  %s242_s14 = smov [#allocation2]  }
   0x9   :  { %v22_v6 = vld [vmem:[%s312_s0] sm:$0xff]  ;;  %v215_v9 = vld [vmem:[%s315_s3 + $0x10] sm:$0xff]   ;;  %v216_v12 = vld [vmem:[%s315_s3 + $0x8] sm:$0xff]   ;;  %s159_s15 = sshll.u32 %s242_s14, 4  ;;  %s160_s15 = int_to_ptr.vmem [resolvable:$true] %s159_s15 }
   0xa   :  { %192 = vmatpush3.bf16.msra.mxu0 %v212_v3  ;;  %v167_v7 = vld [vmem:[%s313_s1] ss:$0 sm:$0xff]  ;;  %s218_s16 = scalar_lea.vmem %s160_s15, 128  ;;  %p223_p1 = scmp.lt.s32.totalorder %s160_s15, %s160_s15 }
   0xb   :  { %193 = vmatprep.subr.bf16.mxu0 %v240_v1  ;;  %v30_v8 = vmul.f32 %v167_v7, %v22_v6  ;;  %v168_v10 = vld [vmem:[%s314_s2] ss:$0 sm:$0xff]  ;;  %p219_p0 = scmp.ne.s32.totalorder %s160_s15, %s218_s16  ;;  %p224_p2 = scmp.lt.s32.totalorder %s218_s16, %s218_s16 }
   0xc   :  { %v217_v14 = vld [vmem:[%s315_s3] sm:$0xff]  }
   0xd   :  { %v38_v11 = vadd.f32 %v168_v10, %v30_v8  ;;  %v169_v16 = vld [vmem:[%s316_s4] ss:$0 sm:$0xff]  ;;  %p225_p3 = por %p224_p2, %p223_p1 }
   0xe   :  { %194 = vmatpush3.bf16.msra.mxu0 %v213_v4 }
   0xf   :  { %195 = vmatprep.subr.bf16.mxu0 %v240_v1  ;;  %v39_v13 = vmax.f32 %v38_v11, 0.0  ;;  %p226_p4 = pnand %p225_p3, %p219_p0 }
  0x11   :  { %v40_v15 = vpack.c.bf16 %v39_v13, %v39_v13 }
  0x12   :  { %196 = vmatpush3.bf16.msra.mxu0 %v214_v5 }
  0x13   :  { %197 = vmatprep.subr.bf16.mxu0 %v240_v1 }
  0x16   :  { %198 = vmatpush3.bf16.msra.mxu0 %v215_v9 }
  0x17   :  { %199 = vmatprep.subr.bf16.mxu0 %v240_v1 }
  0x1a   :  { %200 = vmatpush3.bf16.msra.mxu0 %v216_v12 }
  0x1b   :  { %201 = vmatprep.subr.bf16.mxu0 %v240_v1 }
  0x1e   :  { %202 = vmatpush3.bf16.msra.mxu0 %v217_v14 }
  0x21   :  { %204 = vmatmul.mubr.bf16.vlgmr.msra.gmra.mxu0 %v40_v15 }
  0xe1   :  { %v146_v17 = vpop.f32.mrf.mxu0 }
  0xe2   :  { %v147_v18 = vadd.f32 %v169_v16, %v146_v17 }
  0xe3   :  { %v205_v19 = vpop.f32.mrf.mxu0 }
  0xe4   :  { %152 = vst [vmem:[#allocation2] sm:$0xff] %v147_v18 }
  0xe5   :  { %v149_v20 = vpop.f32.mrf.mxu0 }
  0xe6   :  { %229 = shalt.err (!%p226_p4)
}
  0xe7   :  { %162 = dma.vmem_to_hbm [thread:$0]  %s160_s15, 128, %s317_s5, [#allocation3]   ;;  %v206_v21 = vpop.f32.mrf.mxu0 }
  0xe8   :  { %238 = dma.done.wait [#allocation3], 128  }
  0xe9   :  { %239 = vsyncadd [#allocation3], 4294967168 }
  0xea   :  { %166 = vsyncpa [#allocation3], 1 }

</bundles_post_ra>
